<compile_context>
chip_gen: v7x
topology: tpu7x:2x2x1
jax: 0.10.0
libtpu: 0.0.40
codegen_flags: <defaults>
</compile_context>

<pallas_src>
import numpy as np
import jax
import jax.numpy as jnp
from jax.experimental import pallas as pl
from jax.experimental.pallas import tpu as pltpu


NBINS = 100
NPARAMS = NBINS + 4          # logits + (lower_xi, lower_beta, upper_xi, upper_beta)
EPS = float(np.finfo(np.float32).eps)


def make_bin_constants(bins_lower_bound: float, bins_upper_bound: float,
                       nbins: int = NBINS):
    """Reproduces Binned.__init__ bin construction; bins are equidistant, so the
    whole geometry folds to four compile-time scalars."""
    bin_min = np.float32(bins_lower_bound) - np.float32(EPS) * 6
    bin_max = np.float32(bins_upper_bound) + np.float32(EPS) * 6
    bin_edges = np.linspace(bin_min, bin_max, nbins + 1, dtype=np.float32)
    edge_min = float(bin_edges[0])
    edge_max = float(bin_edges[-1])
    span = np.float32(edge_max) - np.float32(edge_min)
    inv_width = float(np.float32(nbins) / span)
    # log(bin_width) as a single scalar (differs from the per-bin float32 table
    # only at the ulp level).
    log_width = float(np.log(span / np.float32(nbins)))
    return edge_min, edge_max, inv_width, log_width


def _choose_block_rows(n: int) -> int:
    """Adaptive row tile: >=4 grid steps for moderate N (both v7x TCs + pipeline),
    capped so double-buffered VMEM stays small on v7x's 64 MiB."""
    cap = 4096 if n >= 65536 else 2048
    if n <= 512:
        return n                       # single tile; full-dim block satisfies (8,128) rule
    br = min(cap, max(256, pl.cdiv(n, 4)))
    return ((br + 7) // 8) * 8         # sublane multiple


def _make_kernel(edge_min: float, edge_max: float, inv_width: float,
                 log_width: float, nbins: int):
    """Kernel factory; static bin geometry baked in as compile-time constants."""
    nbins_f = float(nbins)

    def kernel(params_ref,   # VMEM (BR, nbins+4)  rows of the forward() input x
               xdata_ref,    # VMEM (BR, 1)        datapoints
               logp_ref,     # VMEM (BR, 1)        binned log-prob per row
               tails_ref):   # VMEM (BR, 4)        softplus of the 4 tail params
        # Upcast in-kernel so a bf16 producer can feed the kernel directly.
        logits = params_ref[:, :nbins].astype(jnp.float32)      # (BR, nbins)

        # ---- log-softmax pieces -------------------------------------------
        m = jnp.max(logits, axis=-1, keepdims=True)              # XLU reduce (kept)
        z = logits - m                                           # VPU
        ones_col = jnp.ones((nbins, 1), jnp.float32)
        # Softmax denominator on the (idle) MXU instead of a cross-lane reduce.
        denom = jnp.dot(jnp.exp(z), ones_col,
                        preferred_element_type=jnp.float32)      # (BR, 1)
        lse = jnp.log(denom)                                     # EUP

        # ---- arithmetic bin index (equidistant bins) ----------------------
        x = xdata_ref[...].astype(jnp.float32)                   # (BR, 1)
        xc = jnp.clip(x, edge_min, edge_max)                     # out-of-range -> edge bins
        idx_f = jnp.clip(jnp.floor((xc - edge_min) * inv_width), 0.0, nbins_f - 1.0)
        idx = idx_f.astype(jnp.int32)                            # (BR, 1)

        # 'cheap' smoothing: 1.0 at the bin, 0.5 at +-1, 0.25 at +-2 (in range).
        lane = jax.lax.broadcasted_iota(jnp.int32, z.shape, 1)
        d = jnp.abs(lane - idx)                                  # (BR, nbins)
        w = jnp.where(d == 0, 1.0,
            jnp.where(d == 1, 0.5,
            jnp.where(d == 2, 0.25, jnp.zeros_like(z))))

        # Weighted sum of z on the MXU.
        wz_sum = jnp.dot(w * z, ones_col,
                         preferred_element_type=jnp.float32)     # (BR, 1)

        # Sum of smoothing weights, arithmetically from idx (edge bins lose mass).
        sum_w = (1.0
                 + 0.5 * ((idx >= 1).astype(jnp.float32)
                          + (idx <= nbins - 2).astype(jnp.float32))
                 + 0.25 * ((idx >= 2).astype(jnp.float32)
                           + (idx <= nbins - 3).astype(jnp.float32)))

        # logp = sum(w * (z - lse - log_width)) = sum(w*z) - sum_w*(lse + log_width)
        logp_ref[...] = wz_sum - sum_w * (lse + log_width)

        # ---- fused forward(): softplus of the 4 tail parameters ------------
        t = params_ref[:, nbins:nbins + 4].astype(jnp.float32)   # (BR, 4)
        tails_ref[...] = jnp.maximum(t, 0.0) + jnp.log(1.0 + jnp.exp(-jnp.abs(t)))

    return kernel


def spliced_binned_pareto_forward_and_log_prob(
        x_params, x_data, edge_min, edge_max, inv_width, log_width,
        percentile_gen_pareto: float = 0.05):
    """forward() (logits slice at JAX level, tail softplus fused in kernel) +
    binned log_prob (the 'cheap'-smoothed Binned.log_binned_p hot path).

    x_params: (N, NBINS+4) f32 or bf16 — the module's forward() input
    x_data:   (N,) — datapoints for log_prob
    returns (logits (N, NBINS), (lower_xi, lower_beta, upper_xi, upper_beta),
             logp_binned (N,), logp_bins (N,))
    """
    n = x_params.shape[0]
    xd = x_data.reshape(n, 1).astype(jnp.float32)

    br = _choose_block_rows(n)
    grid = (pl.cdiv(n, br),)

    kernel = _make_kernel(edge_min, edge_max, inv_width, log_width, NBINS)

    cost = pl.CostEstimate(
        flops=int(n) * 12 * NBINS,
        transcendentals=int(n) * (NBINS + 8),
        bytes_accessed=int(n) * (NPARAMS + 1 + 1 + 4) * 4,
    )

    logp2d, tails4 = pl.pallas_call(
        kernel,
        grid=grid,
        in_specs=[
            pl.BlockSpec((br, NPARAMS), lambda i: (i, 0)),   # row-tiled params
            pl.BlockSpec((br, 1), lambda i: (i, 0)),         # row-tiled datapoints
        ],
        out_specs=(
            pl.BlockSpec((br, 1), lambda i: (i, 0)),
            pl.BlockSpec((br, 4), lambda i: (i, 0)),
        ),
        out_shape=(
            jax.ShapeDtypeStruct((n, 1), jnp.float32),
            jax.ShapeDtypeStruct((n, 4), jnp.float32),
        ),
        compiler_params=pltpu.CompilerParams(
            dimension_semantics=("parallel",),               # rows are independent
            vmem_limit_bytes=32 * 1024 * 1024,               # safe on v7x (64 MiB phys)
        ),
        cost_estimate=cost,
    )(x_params, xd)

    logp_binned = logp2d.reshape(n)
    lower_xi = tails4[:, 0]
    lower_beta = tails4[:, 1]
    upper_xi = tails4[:, 2]
    upper_beta = tails4[:, 3]

    # forward() logits are a pure slice of the input (no kernel traffic needed);
    # consumers should keep slicing lazily to avoid materializing an (N, NBINS) copy.
    logits = x_params[:, :NBINS]

    # Binned branch of SplicedBinnedPareto.log_p adds log(1 - 2 * percentile).
    logp_bins = logp_binned + jnp.log(1.0 - 2.0 * percentile_gen_pareto)
    # TODO(synk): GenPareto upper/lower tail splice (requires icdf percentile
    # thresholds from a sequential bins-CDF walk) is not kernelized.

    return logits, (lower_xi, lower_beta, upper_xi, upper_beta), logp_binned, logp_bins


def _reference(x_params, x_data, edge_min, edge_max, inv_width, log_width):
    """Pure-JAX mirror of the kernel math (== PyTorch semantics for equidistant
    bins, except exact-edge ties where torch's argmax picks the lower bin, and
    a scalar log(bin_width) that differs from the per-bin table by ulps)."""
    xp = x_params.astype(jnp.float32)
    logits = xp[:, :NBINS]
    log_bins_prob = jax.nn.log_softmax(logits, axis=-1) - log_width
    xc = jnp.clip(x_data[:, None].astype(jnp.float32), edge_min, edge_max)
    idx = jnp.clip(jnp.floor((xc - edge_min) * inv_width), 0.0, NBINS - 1.0)
    idx = idx.astype(jnp.int32)
    lane = jnp.arange(NBINS, dtype=jnp.int32)[None, :]
    d = jnp.abs(lane - idx)
    w = jnp.where(d == 0, 1.0, jnp.where(d == 1, 0.5, jnp.where(d == 2, 0.25, 0.0)))
    logp = jnp.sum(w * log_bins_prob, axis=-1)
    tails = jax.nn.softplus(xp[:, NBINS:])
    return logits, tails, logp


if __name__ == "__main__":
    key = jax.random.PRNGKey(0)
    k1, k2 = jax.random.split(key)

    N = 8                                  # datapoints / parameter rows
    bins_lower_bound, bins_upper_bound = -3.0, 3.0
    percentile_gen_pareto = 0.05
    edge_min, edge_max, inv_width, log_width = make_bin_constants(
        bins_lower_bound, bins_upper_bound, NBINS)

    # Deterministic synthetic inputs: per-row (logits + 4 tail params), datapoints.
    x_params = jax.random.normal(k1, (N, NPARAMS), dtype=jnp.float32)
    x_data = jax.random.uniform(k2, (N,), dtype=jnp.float32, minval=-4.0, maxval=4.0)
    # Exercise the out-of-range (first / last bin) handling explicitly.
    x_data = x_data.at[0].set(-5.0).at[1].set(5.0)

    logits, tails, logp_binned, logp_bins = spliced_binned_pareto_forward_and_log_prob(
        x_params, x_data, edge_min, edge_max, inv_width, log_width,
        percentile_gen_pareto)
    jax.block_until_ready((logits, tails, logp_binned, logp_bins))

    ref_logits, ref_tails, ref_logp = _reference(
        x_params, x_data, edge_min, edge_max, inv_width, log_width)

    assert np.allclose(np.asarray(logits), np.asarray(ref_logits),
                       rtol=1e-6, atol=1e-6)
    assert np.allclose(np.asarray(jnp.stack(tails, axis=-1)), np.asarray(ref_tails),
                       rtol=1e-5, atol=1e-5)
    # Tolerance budgets for the two MXU-routed lane reductions at DEFAULT matmul
    # precision (worst case single-pass bf16 ~2^-9 relative per term); on a full
    # f32 MXU path the observed error is ~1e-6.
    assert np.allclose(np.asarray(logp_binned), np.asarray(ref_logp),
                       rtol=1e-2, atol=1e-2)
    assert np.allclose(np.asarray(logp_bins),
                       np.asarray(ref_logp) + np.log(1.0 - 2.0 * percentile_gen_pareto),
                       rtol=1e-2, atol=1e-2)

    print("KERNEL_OK")
</pallas_src>

<mosaic_0001>
module attributes {stable_mosaic.version = 11 : i64} {
  func.func @kernel(%arg0: i32, %arg1: memref<8x104xf32, #tpu.memory_space<vmem>>, %arg2: memref<8x1xf32, #tpu.memory_space<vmem>>, %arg3: memref<8x1xf32, #tpu.memory_space<vmem>>, %arg4: memref<8x4xf32, #tpu.memory_space<vmem>>) attributes {dimension_semantics = [#tpu.dimension_semantics<parallel>], iteration_bounds = array<i64: 1>, scalar_prefetch = 0 : i64, scratch_operands = 0 : i64, tpu.core_type = #tpu.core_type<tc>, window_params = [{transform_indices = @transform_0, window_bounds = array<i64: 8, 104>}, {transform_indices = @transform_1, window_bounds = array<i64: 8, 1>}, {transform_indices = @transform_2, window_bounds = array<i64: 8, 1>}, {transform_indices = @transform_3, window_bounds = array<i64: 8, 4>}]} {
    %c0 = arith.constant 0 : index
    %c0_0 = arith.constant 0 : index
    %0 = vector.load %arg1[%c0, %c0_0] : memref<8x104xf32, #tpu.memory_space<vmem>>, vector<8x100xf32>
    %cst = arith.constant dense<0xFF800000> : vector<8xf32>
    %1 = vector.multi_reduction <maximumf>, %0, %cst [1] : vector<8x100xf32> to vector<8xf32>
    %2 = vector.shape_cast %1 : vector<8xf32> to vector<8x1xf32>
    %3 = vector.broadcast %2 : vector<8x1xf32> to vector<8x100xf32>
    %4 = arith.subf %0, %3 : vector<8x100xf32>
    %cst_1 = arith.constant 1.000000e+00 : f32
    %5 = vector.broadcast %cst_1 : f32 to vector<100x1xf32>
    %6 = math.exp %4 : vector<8x100xf32>
    %cst_2 = arith.constant dense<0.000000e+00> : vector<8x1xf32>
    %7 = tpu.matmul %6, %5, %cst_2 {dimension_numbers = #tpu.dot_dimension_numbers<[1], [0], [0], [1], [0, 0, 1, 1], [], []>} : vector<8x100xf32>, vector<100x1xf32>, vector<8x1xf32> -> vector<8x1xf32>
    %8 = math.log %7 : vector<8x1xf32>
    %c0_3 = arith.constant 0 : index
    %c0_4 = arith.constant 0 : index
    %9 = vector.load %arg2[%c0_3, %c0_4] : memref<8x1xf32, #tpu.memory_space<vmem>>, vector<8x1xf32>
    %cst_5 = arith.constant -3.00000072 : f32
    %cst_6 = arith.constant 3.00000072 : f32
    %10 = vector.broadcast %cst_5 : f32 to vector<8x1xf32>
    %11 = arith.maximumf %10, %9 : vector<8x1xf32>
    %12 = vector.broadcast %cst_6 : f32 to vector<8x1xf32>
    %13 = arith.minimumf %12, %11 : vector<8x1xf32>
    %cst_7 = arith.constant -3.00000072 : f32
    %14 = vector.broadcast %cst_7 : f32 to vector<8x1xf32>
    %15 = arith.subf %13, %14 : vector<8x1xf32>
    %cst_8 = arith.constant 16.6666622 : f32
    %16 = vector.broadcast %cst_8 : f32 to vector<8x1xf32>
    %17 = arith.mulf %15, %16 : vector<8x1xf32>
    %18 = math.floor %17 : vector<8x1xf32>
    %cst_9 = arith.constant 0.000000e+00 : f32
    %cst_10 = arith.constant 9.900000e+01 : f32
    %19 = vector.broadcast %cst_9 : f32 to vector<8x1xf32>
    %20 = arith.maximumf %19, %18 : vector<8x1xf32>
    %21 = vector.broadcast %cst_10 : f32 to vector<8x1xf32>
    %22 = arith.minimumf %21, %20 : vector<8x1xf32>
    %23 = arith.fptosi %22 : vector<8x1xf32> to vector<8x1xi32>
    %24 = tpu.iota {dimensions = array<i32: 1>} : vector<8x100xi32>
    %25 = vector.broadcast %23 : vector<8x1xi32> to vector<8x100xi32>
    %26 = arith.subi %24, %25 : vector<8x100xi32>
    %27 = math.absi %26 : vector<8x100xi32>
    %c0_i32 = arith.constant 0 : i32
    %28 = vector.broadcast %c0_i32 : i32 to vector<8x100xi32>
    %29 = arith.cmpi eq, %27, %28 : vector<8x100xi32>
    %c1_i32 = arith.constant 1 : i32
    %30 = vector.broadcast %c1_i32 : i32 to vector<8x100xi32>
    %31 = arith.cmpi eq, %27, %30 : vector<8x100xi32>
    %c2_i32 = arith.constant 2 : i32
    %32 = vector.broadcast %c2_i32 : i32 to vector<8x100xi32>
    %33 = arith.cmpi eq, %27, %32 : vector<8x100xi32>
    %cst_11 = arith.constant 0.000000e+00 : f32
    %34 = vector.broadcast %cst_11 : f32 to vector<8x100xf32>
    %cst_12 = arith.constant 2.500000e-01 : f32
    %35 = vector.broadcast %cst_12 : f32 to vector<8x100xf32>
    %36 = arith.select %33, %35, %34 : vector<8x100xi1>, vector<8x100xf32>
    %cst_13 = arith.constant 5.000000e-01 : f32
    %37 = vector.broadcast %cst_13 : f32 to vector<8x100xf32>
    %38 = arith.select %31, %37, %36 : vector<8x100xi1>, vector<8x100xf32>
    %cst_14 = arith.constant 1.000000e+00 : f32
    %39 = vector.broadcast %cst_14 : f32 to vector<8x100xf32>
    %40 = arith.select %29, %39, %38 : vector<8x100xi1>, vector<8x100xf32>
    %41 = arith.mulf %40, %4 : vector<8x100xf32>
    %cst_15 = arith.constant dense<0.000000e+00> : vector<8x1xf32>
    %42 = tpu.matmul %41, %5, %cst_15 {dimension_numbers = #tpu.dot_dimension_numbers<[1], [0], [0], [1], [0, 0, 1, 1], [], []>} : vector<8x100xf32>, vector<100x1xf32>, vector<8x1xf32> -> vector<8x1xf32>
    %c1_i32_16 = arith.constant 1 : i32
    %43 = vector.broadcast %c1_i32_16 : i32 to vector<8x1xi32>
    %44 = arith.cmpi sge, %23, %43 : vector<8x1xi32>
    %45 = arith.extui %44 : vector<8x1xi1> to vector<8x1xi32>
    %46 = arith.sitofp %45 : vector<8x1xi32> to vector<8x1xf32>
    %c98_i32 = arith.constant 98 : i32
    %47 = vector.broadcast %c98_i32 : i32 to vector<8x1xi32>
    %48 = arith.cmpi sle, %23, %47 : vector<8x1xi32>
    %49 = arith.extui %48 : vector<8x1xi1> to vector<8x1xi32>
    %50 = arith.sitofp %49 : vector<8x1xi32> to vector<8x1xf32>
    %51 = arith.addf %46, %50 : vector<8x1xf32>
    %cst_17 = arith.constant 5.000000e-01 : f32
    %52 = vector.broadcast %cst_17 : f32 to vector<8x1xf32>
    %53 = arith.mulf %52, %51 : vector<8x1xf32>
    %cst_18 = arith.constant 1.000000e+00 : f32
    %54 = vector.broadcast %cst_18 : f32 to vector<8x1xf32>
    %55 = arith.addf %54, %53 : vector<8x1xf32>
    %c2_i32_19 = arith.constant 2 : i32
    %56 = vector.broadcast %c2_i32_19 : i32 to vector<8x1xi32>
    %57 = arith.cmpi sge, %23, %56 : vector<8x1xi32>
    %58 = arith.extui %57 : vector<8x1xi1> to vector<8x1xi32>
    %59 = arith.sitofp %58 : vector<8x1xi32> to vector<8x1xf32>
    %c97_i32 = arith.constant 97 : i32
    %60 = vector.broadcast %c97_i32 : i32 to vector<8x1xi32>
    %61 = arith.cmpi sle, %23, %60 : vector<8x1xi32>
    %62 = arith.extui %61 : vector<8x1xi1> to vector<8x1xi32>
    %63 = arith.sitofp %62 : vector<8x1xi32> to vector<8x1xf32>
    %64 = arith.addf %59, %63 : vector<8x1xf32>
    %cst_20 = arith.constant 2.500000e-01 : f32
    %65 = vector.broadcast %cst_20 : f32 to vector<8x1xf32>
    %66 = arith.mulf %65, %64 : vector<8x1xf32>
    %67 = arith.addf %55, %66 : vector<8x1xf32>
    %cst_21 = arith.constant -2.81341052 : f32
    %68 = vector.broadcast %cst_21 : f32 to vector<8x1xf32>
    %69 = arith.addf %8, %68 : vector<8x1xf32>
    %70 = arith.mulf %67, %69 : vector<8x1xf32>
    %71 = arith.subf %42, %70 : vector<8x1xf32>
    %c0_22 = arith.constant 0 : index
    %c0_23 = arith.constant 0 : index
    %72 = vector.load %arg3[%c0_22, %c0_23] : memref<8x1xf32, #tpu.memory_space<vmem>>, vector<8x1xf32>
    tpu.vector_store %arg3[%c0_22, %c0_23], %71 {strides = array<i32>} : memref<8x1xf32, #tpu.memory_space<vmem>>, vector<8x1xf32>,
    %c0_24 = arith.constant 0 : index
    %c100 = arith.constant 100 : index
    %73 = vector.load %arg1[%c0_24, %c100] : memref<8x104xf32, #tpu.memory_space<vmem>>, vector<8x4xf32>
    %cst_25 = arith.constant 0.000000e+00 : f32
    %74 = vector.broadcast %cst_25 : f32 to vector<8x4xf32>
    %75 = arith.maximumf %73, %74 : vector<8x4xf32>
    %76 = math.absf %73 : vector<8x4xf32>
    %cst_26 = arith.constant 0.000000e+00 : f32
    %77 = vector.broadcast %cst_26 : f32 to vector<8x4xf32>
    %78 = arith.subf %77, %76 : vector<8x4xf32>
    %79 = math.exp %78 : vector<8x4xf32>
    %cst_27 = arith.constant 1.000000e+00 : f32
    %80 = vector.broadcast %cst_27 : f32 to vector<8x4xf32>
    %81 = arith.addf %80, %79 : vector<8x4xf32>
    %82 = math.log %81 : vector<8x4xf32>
    %83 = arith.addf %75, %82 : vector<8x4xf32>
    %c0_28 = arith.constant 0 : index
    %c0_29 = arith.constant 0 : index
    %84 = vector.load %arg4[%c0_28, %c0_29] : memref<8x4xf32, #tpu.memory_space<vmem>>, vector<8x4xf32>
    tpu.vector_store %arg4[%c0_28, %c0_29], %83 {strides = array<i32>} : memref<8x4xf32, #tpu.memory_space<vmem>>, vector<8x4xf32>,
    return
  }
  func.func @transform_0(%arg0: i32) -> (i32, i32) {
    %c0_i32 = arith.constant 0 : i32
    %c0_i32_0 = arith.constant 0 : i32
    return %arg0, %c0_i32 : i32, i32
  }
  func.func @transform_1(%arg0: i32) -> (i32, i32) {
    %c0_i32 = arith.constant 0 : i32
    %c0_i32_0 = arith.constant 0 : i32
    return %arg0, %c0_i32 : i32, i32
  }
  func.func @transform_2(%arg0: i32) -> (i32, i32) {
    %c0_i32 = arith.constant 0 : i32
    %c0_i32_0 = arith.constant 0 : i32
    return %arg0, %c0_i32 : i32, i32
  }
  func.func @transform_3(%arg0: i32) -> (i32, i32) {
    %c0_i32 = arith.constant 0 : i32
    %c0_i32_0 = arith.constant 0 : i32
    return %arg0, %c0_i32 : i32, i32
  }
}

</mosaic_0001>

<bundles_post_ra>
// kernel: tpu_custom_call.1
= control target key start
LH: loop header
LB: loop body
LE: loop exit
PB: predicated region body
PF: predicated region fallthrough
CT: control target
= control target key end

     0   :  { %vm14_vm0 = vcmask 818176   ;;  %v384_v1 = vmov 0   ;;  %v385_v3 = vmov 0.0|0.0   ;;  %v386_v6 = vmov 1.0|1.0   ;;  %s432_s0 = inlined_call_operand.vmem [shape: f32[8,104], index: 0, kind: input, shape index: {}]   ;;  %s433_s1 = inlined_call_operand.vmem [shape: f32[8,1], index: 1, kind: input, shape index: {}]   ;;  %s434_s3 = inlined_call_operand.vmem [shape: f32[8,4], index: 3, kind: output, shape index: {1}]   ;;  %s435_s2 = inlined_call_operand.vmem [shape: f32[8,1], index: 2, kind: output, shape index: {0}]  }
   0x1   :  { %v414_v0 = vld [vmem:[%s432_s0] sm:$0xff]  ;;  %375 = vset.pattern.permute.xlu0 %v384_v1  ;;  %342 = vmatprep.subr.bf16.mxu0 %v385_v3  ;;  %v387_v17 = vmov 0.0   ;;  %vm24_vm1 = vcmask 1043456   ;;  %v388_v18 = vmov 1.0   ;;  %vm389_vm2 = vmmov 0   ;;  %s390_s0 = smov 28  }
   0x2   :  { %v100_v2 = vld [vmem:[%s433_s1] sm:$0xff]  ;;  %v15_v4 = vsel %vm14_vm0, %v414_v0, -inf  ;;  %343 = vmatpush3.bf16.msra.mxu0 %v386_v6  ;;  %354 = vmatprep.subr.bf16.mxu1 %v385_v3  ;;  %v223_v11 = vand.u32 2147483647, %v414_v0  ;;  %v222_v21 = vmax.f32 %v414_v0, 0.0  ;;  %v109_v27 = vlaneseq }
   0x3   :  { %v247_v5 = vclamps-f32 %v100_v2, 3.0000007  ;;  %16 = vmax.xlane.f32.xlu0 %v15_v4  ;;  %344 = vmatprep.subr.bf16.mxu0 %v385_v3  ;;  %vm235_vm6 = vcmask 31744   ;;  %vm219_vm11 = vcmask 7168  }
   0x4   :  { %355 = vmatpush3.bf16.msra.mxu1 %v386_v6  ;;  %v224_v13 = vsub.f32 0.0, %v223_v11  ;;  %310 = vmatprep.mubr.msk.f32.mxu0 %vm389_vm2, %v387_v17  ;;  %v110_v29 = vand.u32 127, %v109_v27 }
   0x5   :  { %v248_v7 = vadd.f32 3.0000007, %v247_v5  ;;  %356 = vmatprep.subr.bf16.mxu1 %v385_v3  ;;  %339 = vmatprep.mubr.msk.f32.mxu1 %vm389_vm2, %v387_v17 }
   0x6   :  { %345 = vmatpush3.bf16.msra.mxu0 %v386_v6  ;;  %v225_v15 = vmul.f32 1.442695, %v224_v13 }
   0x7   :  { %v104_v8 = vmul.f32 16.666662, %v248_v7  ;;  %346 = vmatprep.subr.bf16.mxu0 %v385_v3 }
   0x8   :  { %357 = vmatpush3.bf16.msra.mxu1 %v386_v6  ;;  %376 = vpow2.f32 %v225_v15 }
   0x9   :  { %v105_v9 = vfloor.f32 %v104_v8  ;;  %358 = vmatprep.subr.bf16.mxu1 %v385_v3 }
   0xa   :  { %347 = vmatpush3.bf16.msra.mxu0 %v386_v6 }
   0xb   :  { %v106_v10 = vmax.f32 %v105_v9, 0.0  ;;  %348 = vmatprep.subr.bf16.mxu0 %v385_v3 }
   0xc   :  { %359 = vmatpush3.bf16.msra.mxu1 %v386_v6 }
   0xd   :  { %v107_v12 = vmin.f32 %v106_v10, 99.0  ;;  %360 = vmatprep.subr.bf16.mxu1 %v385_v3 }
   0xe   :  { %349 = vmatpush3.bf16.msra.mxu0 %v386_v6 }
   0xf   :  { %350 = vmatprep.subr.bf16.mxu0 %v385_v3  ;;  %v366_v14 = vtrunc.f32 %v107_v12 }
  0x10   :  { %361 = vmatpush3.bf16.msra.mxu1 %v386_v6 }
  0x11   :  { %362 = vmatprep.subr.bf16.mxu1 %v385_v3  ;;  %v367_v16 = vcvt.f32.s32 %v366_v14 }
  0x12   :  { %351 = vmatpush3.bf16.msra.mxu0 %v386_v6  ;;  %v377_v19 = vpop.eup %376 }
  0x13   :  { %352 = vmatprep.subr.bf16.mxu0 %v385_v3  ;;  %v227_v20 = vadd.f32 1.0, %v377_v19  ;;  %vm198_vm7 = vcmp.ge.s32.totalorder %v367_v16, 1  ;;  %vm201_vm8 = vcmp.le.s32.totalorder %v367_v16, 98  ;;  %vm207_vm9 = vcmp.ge.s32.totalorder %v367_v16, 2 }
  0x14   :  { %363 = vmatpush3.bf16.msra.mxu1 %v386_v6  ;;  %v252_v40 = vsel %vm198_vm7, 1.0, %v387_v17  ;;  %v253_v41 = vsel %vm201_vm8, 1.0, %v387_v17  ;;  %vm210_vm10 = vcmp.le.s32.totalorder %v367_v16, 97  ;;  %v254_v45 = vsel %vm207_vm9, 1.0, %v387_v17 }
  0x15   :  { %364 = vmatprep.subr.bf16.mxu1 %v385_v3  ;;  %378 = vlog2.f32 %v227_v20  ;;  %v204_v43 = vadd.f32 %v253_v41, %v252_v40  ;;  %v255_v46 = vsel %vm210_vm10, 1.0, %v387_v17 }
  0x16   :  { %353 = vmatpush3.bf16.msra.mxu0 %v386_v6  ;;  %v213_v48 = vadd.f32 %v255_v46, %v254_v45 }
  0x17   :  { %308 = vmatprep.subr.mxu0 %v387_v17  ;;  %v205_v47 = vmul.f32 0.5, %v204_v43 }
  0x18   :  { %365 = vmatpush3.bf16.msra.mxu1 %v386_v6  ;;  %v214_v52 = vmul.f32 0.25, %v213_v48 }
  0x19   :  { %112 = vperm.xlu0 %375, %v367_v16   ;;  %337 = vmatprep.subr.mxu1 %v387_v17  ;;  %v206_v51 = vadd.f32 1.0, %v205_v47 }
  0x1a   :  { %309 = vmatpush3.msk.msra.mxu0 %vm24_vm1, %v388_v18 }
  0x1b   :  { %v215_v55 = vadd.f32 %v214_v52, %v206_v51 }
  0x1c   :  { %338 = vmatpush3.msk.msra.mxu1 %vm24_vm1, %v388_v18 }
  0x1f   :  { %v379_v22 = vpop.eup %378 }
  0x20   :  { %v229_v23 = vmul.f32 0.6931472, %v379_v22 }
  0x22   :  { %v230_v24 = vadd.f32 %v229_v23, %v222_v21 }
  0x24   :  { %232 = vrot.lane.b32.xlu1 %v230_v24, %s390_s0 }
  0x90   :  { %v17_v25 = vpop.xlane.xlu0 %16 }
  0x91   :  { %v18_v26 = vsub.f32 %v414_v0, %v17_v25 }
  0x93   :  { %v19_v28 = vmul.f32 1.442695, %v18_v26 }
  0x95   :  { %380 = vpow2.f32 %v19_v28 }
  0x96   :  { %v233_v39 = vpop.permute.xlu1 %232 }
  0x97   :  { %236 = vst.msk [vmem:[%s434_s3] sm:$0xff] %vm235_vm6, %v233_v39 }
  0x98   :  { %v113_v30 = vpop.permute.xlu0 %112 }
  0x99   :  { %v114_v31 = vsub.s32 %v110_v29, %v113_v30 }
  0x9b   :  { %v116_v32 = vsub.s32 0, %v114_v31 }
  0x9d   :  { %v249_v33 = vmin.u32 %v116_v32, %v114_v31 }
  0x9f   :  { %v381_v34 = vpop.eup %380  ;;  %vm118_vm3 = vcmp.eq.s32.totalorder %v249_v33, 0  ;;  %vm119_vm4 = vcmp.eq.s32.totalorder %v249_v33, 1  ;;  %vm120_vm5 = vcmp.eq.s32.totalorder %v249_v33, 2 }
  0xa0   :  { %v121_v35 = vsel %vm120_vm5, 0.25, %v387_v17  ;;  %311 = vmatmul.mubr.msk.f32.vlgmr.msra.gmra.mrb[0].mxu0 %vm14_vm0, %v381_v34 }
  0xa1   :  { %v122_v36 = vsel %vm119_vm4, 0.5, %v121_v35 }
  0xa2   :  { %v123_v37 = vsel %vm118_vm3, 1.0, %v122_v36 }
  0xa3   :  { %v124_v38 = vmul.f32 %v123_v37, %v18_v26 }
  0xa5   :  { %340 = vmatmul.mubr.msk.f32.vlgmr.msra.gmra.mrb[0].mxu1 %vm14_vm0, %v124_v38 }
 0x173   :  { %v94_v42 = vpop.f32.mrb[0].mxu0 }
 0x174   :  { %382 = vlog2.f32 %v94_v42  ;;  %v312_v44 = vpop.f32.mrb[1].mxu0 }
 0x178   :  { %v194_v49 = vpop.f32.mrb[0].mxu1 }
 0x179   :  { %v341_v50 = vpop.f32.mrb[1].mxu1 }
 0x17e   :  { %v383_v53 = vpop.eup %382 }
 0x17f   :  { %v99_v54 = vmul.f32 0.6931472, %v383_v53 }
 0x181   :  { %v216_v56 = vadd.f32 -2.8134105, %v99_v54 }
 0x183   :  { %v217_v57 = vmul.f32 %v216_v56, %v215_v55 }
 0x185   :  { %v218_v58 = vsub.f32 %v194_v49, %v217_v57 }
 0x187   :  { %220 = vst.msk [vmem:[%s435_s2] sm:$0xff] %vm219_vm11, %v218_v58 }

</bundles_post_ra>
